<compile_context>
chip_gen: v5e
topology: v5e:2x2
jax: 0.10.0
libtpu: 0.0.40
codegen_flags: <defaults>
</compile_context>

<pallas_src>
import functools

import numpy as np
import jax
import jax.numpy as jnp
from jax import lax
from jax.experimental import pallas as pl
from jax.experimental.pallas import tpu as pltpu


# ----------------------------------------------------------------------------
# Pass 1: L2-normalize both views into a single (2B, D) feature slab.
# ----------------------------------------------------------------------------
def _normalize_kernel(zi_ref, zj_ref, fn_ref, *, rb):
    g = pl.program_id(0)                       # output row block (0 .. 2B/TM)
    # First `rb` blocks come from z_i, the rest from z_j (block index g % rb).
    x = jnp.where(g < rb, zi_ref[...], zj_ref[...]).astype(jnp.float32)
    # F.normalize(dim=1): x / max(||x||, 1e-12)  ==  x * rsqrt(max(||x||^2, 1e-24))
    ssq = jnp.sum(x * x, axis=1, keepdims=True)
    fn_ref[...] = (x * lax.rsqrt(jnp.maximum(ssq, 1e-24))).astype(fn_ref.dtype)


# ----------------------------------------------------------------------------
# Pass 2: sim/T row slab + positive extraction + fused diagonal/positive drop.
# ----------------------------------------------------------------------------
def _logits_kernel(fn_row_ref, fn_all_ref, out_ref, *, b, n, tm, inv_t):
    g = pl.program_id(0)

    # Fold 1/temperature into the (TM, D) MXU operand (cheaper than scaling
    # the (TM, 2B) result).
    lhs = (fn_row_ref[...].astype(jnp.float32) * inv_t).astype(fn_all_ref.dtype)

    # (TM, 2B) slab of sim / T: NT contraction on the MXU, f32 accumulation.
    s = lax.dot_general(lhs, fn_all_ref[...],
                        dimension_numbers=(((1,), (1,)), ((), ())),
                        preferred_element_type=jnp.float32)

    # Per-row indices.  A row block never straddles the B boundary (TM | B).
    row = lax.broadcasted_iota(jnp.int32, (tm, 1), 0)
    r = ((g * tm) % b) + row                       # global_row mod B
    pos_col = ((g * tm + b) % n) + row             # (global_row + B) mod 2B

    # Positive similarity (already /T) extracted from the same slab.
    col = lax.broadcasted_iota(jnp.int32, (tm, n), 1)
    pos = jnp.sum(jnp.where(col == pos_col, s, 0.0), axis=1, keepdims=True)

    # Drop columns {r, B + r} (diagonal + positive).  Output column k reads
    # source column k (k < r), k+1 (r <= k < B-1+r) or k+2 (otherwise).
    a0 = s[:, : n - 2]
    a1 = pltpu.roll(s, n - 1, 1)[:, : n - 2]       # == s[:, k + 1]
    a2 = pltpu.roll(s, n - 2, 1)[:, : n - 2]       # == s[:, k + 2]
    k = lax.broadcasted_iota(jnp.int32, (tm, n - 2), 1)
    sel = jnp.where(k < r, a0, jnp.where(k < (b - 1) + r, a1, a2))

    out_ref[...] = (sel - pos).astype(out_ref.dtype)


# ----------------------------------------------------------------------------
# Wrapper.
# ----------------------------------------------------------------------------
def flatnce_forward(z_i, z_j, temperature, *, feat_dtype=jnp.bfloat16, tm=128):
    b, d = z_i.shape
    assert z_j.shape == (b, d)
    n = 2 * b
    tm = min(tm, b)
    assert b % tm == 0 and tm % 8 == 0, "row tile must divide B and be 8-aligned"
    rb = b // tm
    inv_t = float(1.0 / float(temperature))

    # ---- pass 1: normalize both views into one (2B, D) slab -----------------
    fn = pl.pallas_call(
        functools.partial(_normalize_kernel, rb=rb),
        grid=(n // tm,),
        in_specs=[pl.BlockSpec((tm, d), lambda g: (g % rb, 0)),
                  pl.BlockSpec((tm, d), lambda g: (g % rb, 0))],
        out_specs=pl.BlockSpec((tm, d), lambda g: (g, 0)),
        out_shape=jax.ShapeDtypeStruct((n, d), feat_dtype),
        compiler_params=pltpu.CompilerParams(
            dimension_semantics=("parallel",)),
    )(z_i, z_j)

    # ---- pass 2: sim/T + fused positive extraction + column drop ------------
    logits = pl.pallas_call(
        functools.partial(_logits_kernel, b=b, n=n, tm=tm, inv_t=inv_t),
        grid=(n // tm,),
        in_specs=[
            # LHS row block (streamed over the grid)
            pl.BlockSpec((tm, d), lambda g: (g, 0)),
            # RHS: full feature slab, resident (constant index map -> one DMA)
            pl.BlockSpec((n, d), lambda g: (0, 0)),
        ],
        out_specs=pl.BlockSpec((tm, n - 2), lambda g: (g, 0)),
        out_shape=jax.ShapeDtypeStruct((n, n - 2), jnp.float32),
        compiler_params=pltpu.CompilerParams(
            dimension_semantics=("parallel",)),
    )(fn, fn)

    # Positive is implicitly "class 0".
    # TODO(synk): PyTorch returns int64 labels; int32 here (JAX x64 disabled).
    labels = jnp.zeros((n,), dtype=jnp.int32)
    # TODO(synk): the PyTorch forward also computes clogits = logsumexp(logits)
    # but never returns it (dead code) -- omitted.
    return logits, labels


# ----------------------------------------------------------------------------
# NumPy float64 reference mirroring the PyTorch module (for the self-check).
# ----------------------------------------------------------------------------
def _reference_np(z_i, z_j, temperature):
    b = z_i.shape[0]
    n = 2 * b
    f = np.concatenate([z_i, z_j], axis=0).astype(np.float64)
    f = f / np.maximum(np.linalg.norm(f, axis=1, keepdims=True), 1e-12)
    sim = f @ f.T
    lab = np.concatenate([np.arange(b), np.arange(b)])
    lab_mat = lab[None, :] == lab[:, None]
    eye = np.eye(n, dtype=bool)
    lab_nd = lab_mat[~eye].reshape(n, n - 1)
    sim_nd = sim[~eye].reshape(n, n - 1)
    pos = sim_nd[lab_nd].reshape(n, 1)
    neg = sim_nd[~lab_nd].reshape(n, -1)
    return (neg - pos) / temperature


if __name__ == "__main__":
    B, D = 128, 64
    temperature = 0.5
    key = jax.random.PRNGKey(0)
    k1, k2 = jax.random.split(key)
    z_i = jax.random.normal(k1, (B, D), dtype=jnp.float32)
    z_j = jax.random.normal(k2, (B, D), dtype=jnp.float32)

    ref = _reference_np(np.asarray(z_i), np.asarray(z_j), temperature)

    # f32 feature path.  Tolerances are set loose enough to be robust to any
    # MXU precision mode while still catching structural/logic errors (which
    # produce O(0.1 .. 1) differences).
    logits32, labels = flatnce_forward(z_i, z_j, temperature,
                                       feat_dtype=jnp.float32)
    logits32 = np.asarray(jax.block_until_ready(logits32))
    labels = np.asarray(jax.block_until_ready(labels))
    assert logits32.shape == (2 * B, 2 * B - 2)
    assert labels.shape == (2 * B,) and not labels.any()
    np.testing.assert_allclose(logits32, ref, rtol=1e-3, atol=2e-2)

    # bf16 feature path (default / performance path): looser check.
    logits16, _ = flatnce_forward(z_i, z_j, temperature)
    logits16 = np.asarray(jax.block_until_ready(logits16))
    np.testing.assert_allclose(logits16, ref, rtol=1e-2, atol=5e-2)

    print("KERNEL_OK")
</pallas_src>

<mosaic_0001>
module attributes {stable_mosaic.version = 11 : i64} {
  func.func @_normalize_kernel(%arg0: i32, %arg1: memref<128x64xf32, #tpu.memory_space<vmem>>, %arg2: memref<128x64xf32, #tpu.memory_space<vmem>>, %arg3: memref<128x64xf32, #tpu.memory_space<vmem>>) attributes {dimension_semantics = [#tpu.dimension_semantics<parallel>], iteration_bounds = array<i64: 2>, scalar_prefetch = 0 : i64, scratch_operands = 0 : i64, tpu.core_type = #tpu.core_type<tc>, window_params = [{transform_indices = @transform_0, window_bounds = array<i64: 128, 64>}, {transform_indices = @transform_1, window_bounds = array<i64: 128, 64>}, {transform_indices = @transform_2, window_bounds = array<i64: 128, 64>}]} {
    %c1_i32 = arith.constant 1 : i32
    %0 = arith.cmpi slt, %arg0, %c1_i32 : i32
    %c0 = arith.constant 0 : index
    %c0_0 = arith.constant 0 : index
    %1 = vector.load %arg1[%c0, %c0_0] : memref<128x64xf32, #tpu.memory_space<vmem>>, vector<128x64xf32>
    %c0_1 = arith.constant 0 : index
    %c0_2 = arith.constant 0 : index
    %2 = vector.load %arg2[%c0_1, %c0_2] : memref<128x64xf32, #tpu.memory_space<vmem>>, vector<128x64xf32>
    %3 = arith.select %0, %1, %2 : vector<128x64xf32>
    %4 = arith.mulf %3, %3 : vector<128x64xf32>
    %cst = arith.constant dense<0.000000e+00> : vector<128xf32>
    %5 = vector.multi_reduction <add>, %4, %cst [1] : vector<128x64xf32> to vector<128xf32>
    %6 = vector.shape_cast %5 : vector<128xf32> to vector<128x1xf32>
    %cst_3 = arith.constant 1.000000e-24 : f32
    %7 = vector.broadcast %cst_3 : f32 to vector<128x1xf32>
    %8 = arith.maximumf %6, %7 : vector<128x1xf32>
    %9 = math.rsqrt %8 : vector<128x1xf32>
    %10 = vector.broadcast %9 : vector<128x1xf32> to vector<128x64xf32>
    %11 = arith.mulf %3, %10 : vector<128x64xf32>
    %c0_4 = arith.constant 0 : index
    %c0_5 = arith.constant 0 : index
    %12 = vector.load %arg3[%c0_4, %c0_5] : memref<128x64xf32, #tpu.memory_space<vmem>>, vector<128x64xf32>
    tpu.vector_store %arg3[%c0_4, %c0_5], %11 {strides = array<i32>} : memref<128x64xf32, #tpu.memory_space<vmem>>, vector<128x64xf32>,
    return
  }
  func.func @transform_0(%arg0: i32) -> (i32, i32) {
    %c1_i32 = arith.constant 1 : i32
    %c0_i32 = arith.constant 0 : i32
    %0 = arith.cmpi eq, %c1_i32, %c0_i32 : i32
    %c1_i32_0 = arith.constant 1 : i32
    %1 = arith.select %0, %c1_i32_0, %c1_i32 : i32
    %2 = arith.remsi %arg0, %1 : i32
    %c0_i32_1 = arith.constant 0 : i32
    %3 = arith.cmpi ne, %2, %c0_i32_1 : i32
    %c0_i32_2 = arith.constant 0 : i32
    %4 = arith.cmpi slt, %2, %c0_i32_2 : i32
    %c0_i32_3 = arith.constant 0 : i32
    %5 = arith.cmpi slt, %1, %c0_i32_3 : i32
    %6 = arith.xori %4, %5 : i1
    %7 = arith.andi %6, %3 : i1
    %8 = arith.addi %2, %1 : i32
    %9 = arith.select %7, %8, %2 : i32
    %c0_i32_4 = arith.constant 0 : i32
    %c0_i32_5 = arith.constant 0 : i32
    return %9, %c0_i32_4 : i32, i32
  }
  func.func @transform_1(%arg0: i32) -> (i32, i32) {
    %c1_i32 = arith.constant 1 : i32
    %c0_i32 = arith.constant 0 : i32
    %0 = arith.cmpi eq, %c1_i32, %c0_i32 : i32
    %c1_i32_0 = arith.constant 1 : i32
    %1 = arith.select %0, %c1_i32_0, %c1_i32 : i32
    %2 = arith.remsi %arg0, %1 : i32
    %c0_i32_1 = arith.constant 0 : i32
    %3 = arith.cmpi ne, %2, %c0_i32_1 : i32
    %c0_i32_2 = arith.constant 0 : i32
    %4 = arith.cmpi slt, %2, %c0_i32_2 : i32
    %c0_i32_3 = arith.constant 0 : i32
    %5 = arith.cmpi slt, %1, %c0_i32_3 : i32
    %6 = arith.xori %4, %5 : i1
    %7 = arith.andi %6, %3 : i1
    %8 = arith.addi %2, %1 : i32
    %9 = arith.select %7, %8, %2 : i32
    %c0_i32_4 = arith.constant 0 : i32
    %c0_i32_5 = arith.constant 0 : i32
    return %9, %c0_i32_4 : i32, i32
  }
  func.func @transform_2(%arg0: i32) -> (i32, i32) {
    %c0_i32 = arith.constant 0 : i32
    %c0_i32_0 = arith.constant 0 : i32
    return %arg0, %c0_i32 : i32, i32
  }
}

</mosaic_0001>

<bundles_post_ra>
// kernel: tpu_custom_call.1
= control target key start
LH: loop header
LB: loop body
LE: loop exit
PB: predicated region body
PF: predicated region fallthrough
CT: control target
= control target key end

     0   :  { %s565_s9 = smov 0   ;;  %s965_s0 = inlined_call_operand.vmem [shape: f32[128,64], index: 0, kind: input, shape index: {}]   ;;  %s966_s1 = inlined_call_operand.vmem [shape: f32[128,64], index: 1, kind: input, shape index: {}]   ;;  %s967_s2 = inlined_call_operand.vmem [shape: f32[256,64], index: 2, kind: output, shape index: {}]  }
   0x1 LB: > { %s494_s10 = sadd.s32 4294967295, %s548_s9   ;;  %p497_p0 = scmp.ge.s32.totalorder %s548_s9, 1  ;;  %s548_s9 = sphi %s565_s9, %s12_s9  }
   0x2   : > { %p102_p1 = scmp.lt.s32.totalorder %s548_s9, 3 }
   0x4   : > { %p103_p2 = pnand %p497_p0, %p102_p1 }
   0x5   : > { %p125_p3 = scmp.lt.s32.totalorder (!%p103_p2), %s494_s10, 1  ;;  %s498_s24 = sshll.u32 (!%p103_p2), %s494_s10, 4 }
   0x6   : > { %106 = sbr.rel (%p103_p2) target bundleno = 199 (0xc7), region = 28  ;;  %p120_p4 = scmp.lt.s32.totalorder (!%p103_p2), %s498_s24, 31 }
   0xb   : > { %v130_v0 = vld [vmem:[%s965_s0 + $0x20] sm:$0xff]  ;;  %s158_s15 = scalar_select %p125_p3, 1, 0  ;;  %v128_v2 = vld [vmem:[%s965_s0 + $0x10] sm:$0xff]  ;;  %v131_v7 = vld [vmem:[%s965_s0 + $0x28] sm:$0xff]  ;;  %vm193_vm1 = vcmask 523264  }
   0xc   : > { %v146_v1 = vld [vmem:[%s966_s1 + $0x20] sm:$0xff]  ;;  %v144_v3 = vld [vmem:[%s966_s1 + $0x10] sm:$0xff]  ;;  %v147_v8 = vld [vmem:[%s966_s1 + $0x28] sm:$0xff]  ;;  %s969_s24 = smov (!%p120_p4, %s498_s24), 31 }
   0xd   : > { %v126_v4 = vld [vmem:[%s965_s0] sm:$0xff]  ;;  %v593_v6 = vstv %s158_s15  ;;  %v129_v9 = vld [vmem:[%s965_s0 + $0x18] sm:$0xff]  ;;  %v127_v14 = vld [vmem:[%s965_s0 + $0x8] sm:$0xff]  ;;  %s499_s10 = sshll.u32 %s969_s24, 3 }
   0xe   : > { %v142_v5 = vld [vmem:[%s966_s1] sm:$0xff]  ;;  %vm160_vm0 = vcmp.eq.s32.totalorder %v593_v6, 1  ;;  %v145_v10 = vld [vmem:[%s966_s1 + $0x18] sm:$0xff]  ;;  %v143_v15 = vld [vmem:[%s966_s1 + $0x8] sm:$0xff]  ;;  %s820_s27 = scalar_lea.vmem %s967_s2, %s499_s10 }
   0xf   : > { %v610_v11 = vsel %vm160_vm0, %v130_v0, %v146_v1  ;;  %v614_v12 = vsel %vm160_vm0, %v128_v2, %v144_v3  ;;  %v618_v13 = vsel %vm160_vm0, %v126_v4, %v142_v5  ;;  %v634_v19 = vsel %vm160_vm0, %v131_v7, %v147_v8  ;;  %v134_v28 = vld [vmem:[%s965_s0 + $0x40] sm:$0xff]  ;;  %v133_v30 = vld [vmem:[%s965_s0 + $0x38] sm:$0xff]  ;;  %v132_v32 = vld [vmem:[%s965_s0 + $0x30] sm:$0xff] }
  0x10   : > { %v181_v16 = vmul.f32 %v610_v11, %v610_v11  ;;  %v179_v17 = vmul.f32 %v614_v12, %v614_v12  ;;  %v177_v18 = vmul.f32 %v618_v13, %v618_v13  ;;  %v638_v20 = vsel %vm160_vm0, %v129_v9, %v145_v10  ;;  %v150_v29 = vld [vmem:[%s966_s1 + $0x40] sm:$0xff]  ;;  %v149_v31 = vld [vmem:[%s966_s1 + $0x38] sm:$0xff]  ;;  %v148_v33 = vld [vmem:[%s966_s1 + $0x30] sm:$0xff] }
  0x11   : > { %v645_v24 = vsel %vm160_vm0, %v127_v14, %v143_v15  ;;  %v182_v25 = vmul.f32 %v634_v19, %v634_v19  ;;  %v180_v26 = vmul.f32 %v638_v20, %v638_v20  ;;  %v676_v37 = vsel %vm160_vm0, %v134_v28, %v150_v29  ;;  %v137_v43 = vld [vmem:[%s965_s0 + $0x58] sm:$0xff]  ;;  %v136_v45 = vld [vmem:[%s965_s0 + $0x50] sm:$0xff]  ;;  %v135_v47 = vld [vmem:[%s965_s0 + $0x48] sm:$0xff] }
  0x12   : > { %v206_v21 = vsel %vm193_vm1, %v181_v16, 0.0  ;;  %v200_v22 = vsel %vm193_vm1, %v179_v17, 0.0  ;;  %v194_v23 = vsel %vm193_vm1, %v177_v18, 0.0  ;;  %v178_v27 = vmul.f32 %v645_v24, %v645_v24  ;;  %v153_v44 = vld [vmem:[%s966_s1 + $0x58] sm:$0xff]  ;;  %v152_v46 = vld [vmem:[%s966_s1 + $0x50] sm:$0xff]  ;;  %v151_v48 = vld [vmem:[%s966_s1 + $0x48] sm:$0xff] }
  0x13   : > { %207 = vadd.xlane.f32.xlu2 %v206_v21  ;;  %201 = vadd.xlane.f32.xlu1 %v200_v22  ;;  %v209_v34 = vsel %vm193_vm1, %v182_v25, 0.0  ;;  %v203_v35 = vsel %vm193_vm1, %v180_v26, 0.0  ;;  %v680_v38 = vsel %vm160_vm0, %v133_v30, %v149_v31  ;;  %v684_v39 = vsel %vm160_vm0, %v132_v32, %v148_v33  ;;  %v140_v58 = vld [vmem:[%s965_s0 + $0x70] sm:$0xff]  ;;  %v139_v60 = vld [vmem:[%s965_s0 + $0x68] sm:$0xff]  ;;  %v138_v62 = vld [vmem:[%s965_s0 + $0x60] sm:$0xff] }
  0x14   : > { %195 = vadd.xlane.f32.xlu0 %v194_v23  ;;  %v197_v36 = vsel %vm193_vm1, %v178_v27, 0.0  ;;  %v185_v40 = vmul.f32 %v676_v37, %v676_v37  ;;  %v184_v41 = vmul.f32 %v680_v38, %v680_v38  ;;  %v183_v42 = vmul.f32 %v684_v39, %v684_v39  ;;  %v156_v59 = vld [vmem:[%s966_s1 + $0x70] sm:$0xff]  ;;  %v155_v61 = vld [vmem:[%s966_s1 + $0x68] sm:$0xff]  ;;  %v154_v63 = vld [vmem:[%s966_s1 + $0x60] sm:$0xff] }
  0x15   : > { %v715_v52 = vsel %vm160_vm0, %v137_v43, %v153_v44  ;;  %v719_v53 = vsel %vm160_vm0, %v136_v45, %v152_v46  ;;  %v723_v54 = vsel %vm160_vm0, %v135_v47, %v151_v48  ;;  %v754_v3 = vsel %vm160_vm0, %v140_v58, %v156_v59  ;;  %v141_v10 = vld [vmem:[%s965_s0 + $0x78] sm:$0xff] }
  0x16   : > { %v218_v49 = vsel %vm193_vm1, %v185_v40, 0.0  ;;  %v215_v50 = vsel %vm193_vm1, %v184_v41, 0.0  ;;  %v212_v51 = vsel %vm193_vm1, %v183_v42, 0.0  ;;  %v188_v55 = vmul.f32 %v715_v52, %v715_v52  ;;  %v157_v14 = vld [vmem:[%s966_s1 + $0x78] sm:$0xff] }
  0x17   : > { %v187_v56 = vmul.f32 %v719_v53, %v719_v53  ;;  %v186_v57 = vmul.f32 %v723_v54, %v723_v54  ;;  %v758_v4 = vsel %vm160_vm0, %v139_v60, %v155_v61  ;;  %v762_v5 = vsel %vm160_vm0, %v138_v62, %v154_v63 }
  0x18   : > { %v227_v0 = vsel %vm193_vm1, %v188_v55, 0.0  ;;  %v191_v7 = vmul.f32 %v754_v3, %v754_v3  ;;  %v190_v8 = vmul.f32 %v758_v4, %v758_v4  ;;  %v189_v9 = vmul.f32 %v762_v5, %v762_v5 }
  0x19   : > { %v224_v1 = vsel %vm193_vm1, %v187_v56, 0.0  ;;  %v221_v2 = vsel %vm193_vm1, %v186_v57, 0.0  ;;  %v781_v18 = vsel %vm160_vm0, %v141_v10, %v157_v14 }
  0x1a   : > { %v236_v15 = vsel %vm193_vm1, %v191_v7, 0.0  ;;  %v233_v16 = vsel %vm193_vm1, %v190_v8, 0.0  ;;  %v230_v17 = vsel %vm193_vm1, %v189_v9, 0.0  ;;  %v192_v21 = vmul.f32 %v781_v18, %v781_v18 }
  0x1b   : > { %210 = vadd.xlane.f32.xlu2 %v209_v34  ;;  %204 = vadd.xlane.f32.xlu1 %v203_v35 }
  0x1c   : > { %198 = vadd.xlane.f32.xlu0 %v197_v36  ;;  %v239_v22 = vsel %vm193_vm1, %v192_v21, 0.0 }
  0x23   : > { %219 = vadd.xlane.f32.xlu2 %v218_v49  ;;  %216 = vadd.xlane.f32.xlu1 %v215_v50 }
  0x24   : > { %213 = vadd.xlane.f32.xlu0 %v212_v51 }
  0x2b   : > { %228 = vadd.xlane.f32.xlu2 %v227_v0  ;;  %225 = vadd.xlane.f32.xlu1 %v224_v1 }
  0x2c   : > { %222 = vadd.xlane.f32.xlu0 %v221_v2 }
  0x33   : > { %237 = vadd.xlane.f32.xlu2 %v236_v15  ;;  %234 = vadd.xlane.f32.xlu1 %v233_v16 }
  0x34   : > { %231 = vadd.xlane.f32.xlu0 %v230_v17 }
  0x3c   : > { %240 = vadd.xlane.f32.xlu0 %v239_v22 }
  0x86   : > { %v208_v23 = vpop.xlane.xlu2 %207  ;;  %v202_v25 = vpop.xlane.xlu1 %201 }
  0x87   : > { %v246_v26 = vmax.f32 %v208_v23, 1e-24  ;;  %v244_v27 = vmax.f32 %v202_v25, 1e-24  ;;  %v196_v28 = vpop.xlane.xlu0 %195 }
  0x88   : > { %v242_v29 = vmax.f32 %v196_v28, 1e-24 }
  0x89   : > { %510 = vrsqrt.f32 %v246_v26  ;;  %vm304_vm2 = vweird.f32 %v246_v26  ;;  %vm284_vm4 = vweird.f32 %v244_v27 }
  0x8a   : > { %512 = vrsqrt.f32 %v244_v27  ;;  %vm264_vm6 = vweird.f32 %v242_v29 }
  0x8b   : > { %514 = vrsqrt.f32 %v242_v29 }
  0x8e   : > { %v211_v6 = vpop.xlane.xlu2 %210  ;;  %v205_v30 = vpop.xlane.xlu1 %204 }
  0x8f   : > { %v511_v31 = vpop.eup %510  ;;  %v788_v32 = vmax.f32 %v211_v6, 1e-24  ;;  %v790_v33 = vmax.f32 %v205_v30, 1e-24  ;;  %v199_v34 = vpop.xlane.xlu0 %198 }
  0x90   : > { %v513_v35 = vpop.eup %512  ;;  %v299_v36 = vmul.f32 %v511_v31, %v246_v26  ;;  %v792_v40 = vmax.f32 %v199_v34, 1e-24  ;;  %vm305_vm3 = vweird.f32 %v511_v31 }
  0x91   : > { %v515_v41 = vpop.eup %514  ;;  %v279_v42 = vmul.f32 %v513_v35, %v244_v27  ;;  %516 = vrsqrt.f32 %v788_v32  ;;  %vm285_vm5 = vweird.f32 %v513_v35  ;;  %vm306_vm8 = vmor %vm304_vm2, %vm305_vm3  ;;  %vm314_vm11 = vweird.f32 %v788_v32 }
  0x92   : > { %v300_v43 = vmul.f32 %v511_v31, %v299_v36  ;;  %v259_v44 = vmul.f32 %v515_v41, %v242_v29  ;;  %518 = vrsqrt.f32 %v790_v33  ;;  %vm265_vm7 = vweird.f32 %v515_v41  ;;  %vm286_vm9 = vmor %vm284_vm4, %vm285_vm5 }
  0x93   : > { %v280_v45 = vmul.f32 %v513_v35, %v279_v42  ;;  %520 = vrsqrt.f32 %v792_v40  ;;  %vm266_vm10 = vmor %vm264_vm6, %vm265_vm7  ;;  %vm294_vm12 = vweird.f32 %v790_v33  ;;  %vm274_vm2 = vweird.f32 %v792_v40 }
  0x94   : > { %v301_v46 = vmul.f32 0.5, %v300_v43  ;;  %v260_v47 = vmul.f32 %v515_v41, %v259_v44 }
  0x95   : > { %v281_v48 = vmul.f32 0.5, %v280_v45 }
  0x96   : > { %v302_v49 = vsub.f32 1.5, %v301_v46  ;;  %v261_v50 = vmul.f32 0.5, %v260_v47  ;;  %v220_v51 = vpop.xlane.xlu2 %219  ;;  %v217_v55 = vpop.xlane.xlu1 %216 }
  0x97   : > { %v799_v56 = vpop.eup %516  ;;  %v282_v57 = vsub.f32 1.5, %v281_v48  ;;  %v802_v58 = vmax.f32 %v220_v51, 1e-24  ;;  %v214_v59 = vpop.xlane.xlu0 %213  ;;  %v815_v7 = vmax.f32 %v217_v55, 1e-24 }
  0x98   : > { %v804_v60 = vpop.eup %518  ;;  %v303_v61 = vmul.f32 %v511_v31, %v302_v49  ;;  %v262_v62 = vsub.f32 1.5, %v261_v50  ;;  %v309_v63 = vmul.f32 %v799_v56, %v788_v32  ;;  %vm315_vm13 = vweird.f32 %v799_v56 }
  0x99   : > { %v808_v0 = vpop.eup %520  ;;  %v283_v1 = vmul.f32 %v513_v35, %v282_v57  ;;  %v289_v2 = vmul.f32 %v804_v60, %v790_v33  ;;  %522 = vrsqrt.f32 %v802_v58  ;;  %v842_v28 = vmax.f32 %v214_v59, 1e-24  ;;  %vm316_vm0 = vmor %vm314_vm11, %vm315_vm13 }
  0x9a   : > { %v307_v8 = vsel %vm306_vm8, %v511_v31, %v303_v61  ;;  %v263_v9 = vmul.f32 %v515_v41, %v262_v62  ;;  %v310_v10 = vmul.f32 %v799_v56, %v309_v63  ;;  %v269_v14 = vmul.f32 %v808_v0, %v792_v40 }
  0x9b   : > { %v422_v15 = vmul.f32 %v307_v8, %v610_v11  ;;  %v287_v16 = vsel %vm286_vm9, %v513_v35, %v283_v1  ;;  %v290_v17 = vmul.f32 %v804_v60, %v289_v2  ;;  %524 = vrsqrt.f32 %v815_v7 }
  0x9c   : > { %v420_v21 = vmul.f32 %v287_v16, %v614_v12  ;;  %v267_v22 = vsel %vm266_vm10, %v515_v41, %v263_v9  ;;  %v311_v23 = vmul.f32 0.5, %v310_v10  ;;  %v270_v25 = vmul.f32 %v808_v0, %v269_v14 }
  0x9d   : > { %438 = vst.msk [vmem:[%s820_s27 + $0x20] sm:$0xff] %vm193_vm1, %v422_v15  ;;  %v418_v26 = vmul.f32 %v267_v22, %v618_v13  ;;  %v291_v11 = vmul.f32 0.5, %v290_v17  ;;  %vm295_vm14 = vweird.f32 %v804_v60  ;;  %vm275_vm15 = vweird.f32 %v808_v0 }
  0x9e   : > { %436 = vst.msk [vmem:[%s820_s27 + $0x10] sm:$0xff] %vm193_vm1, %v420_v21  ;;  %v312_v27 = vsub.f32 1.5, %v311_v23  ;;  %v271_v12 = vmul.f32 0.5, %v270_v25  ;;  %v229_v29 = vpop.xlane.xlu2 %228  ;;  %v226_v6 = vpop.xlane.xlu1 %225  ;;  %526 = vrsqrt.f32 %v842_v28  ;;  %vm296_vm3 = vmor %vm294_vm12, %vm295_vm14  ;;  %vm344_vm5 = vweird.f32 %v802_v58 }
  0x9f   : > { %v523_v30 = vpop.eup %522  ;;  %434 = vst.msk [vmem:[%s820_s27] sm:$0xff] %vm193_vm1, %v418_v26  ;;  %v292_v31 = vsub.f32 1.5, %v291_v11  ;;  %v847_v13 = vmax.f32 %v229_v29, 1e-24  ;;  %v849_v34 = vmax.f32 %v226_v6, 1e-24  ;;  %v223_v35 = vpop.xlane.xlu0 %222  ;;  %vm276_vm4 = vmor %vm274_vm2, %vm275_vm15  ;;  %vm334_vm7 = vweird.f32 %v815_v7 }
  0xa0   : > { %v313_v36 = vmul.f32 %v799_v56, %v312_v27  ;;  %v272_v41 = vsub.f32 1.5, %v271_v12  ;;  %v339_v42 = vmul.f32 %v523_v30, %v802_v58  ;;  %v875_v55 = vmax.f32 %v223_v35, 1e-24 }
  0xa1   : > { %v293_v43 = vmul.f32 %v804_v60, %v292_v31  ;;  %528 = vrsqrt.f32 %v847_v13  ;;  %v525_v32 = vpop.eup %524  ;;  %vm345_vm6 = vweird.f32 %v523_v30  ;;  %vm324_vm10 = vweird.f32 %v842_v28 }
  0xa2   : > { %v317_v44 = vsel %vm316_vm0, %v799_v56, %v313_v36  ;;  %v273_v45 = vmul.f32 %v808_v0, %v272_v41  ;;  %v340_v46 = vmul.f32 %v523_v30, %v339_v42  ;;  %530 = vrsqrt.f32 %v849_v34  ;;  %vm346_vm8 = vmor %vm344_vm5, %vm345_vm6 }
  0xa3   : > { %v423_v47 = vmul.f32 %v317_v44, %v634_v19  ;;  %v297_v48 = vsel %vm296_vm3, %v804_v60, %v293_v43  ;;  %v329_v50 = vmul.f32 %v525_v32, %v815_v7  ;;  %532 = vrsqrt.f32 %v875_v55 }
  0xa4   : > { %v421_v40 = vmul.f32 %v297_v48, %v638_v20  ;;  %v277_v33 = vsel %vm276_vm4, %v808_v0, %v273_v45  ;;  %v341_v49 = vmul.f32 0.5, %v340_v46  ;;  %v527_v59 = vpop.eup %526  ;;  %vm335_vm9 = vweird.f32 %v525_v32 }
  0xa5   : > { %439 = vst.msk [vmem:[%s820_s27 + $0x28] sm:$0xff] %vm193_vm1, %v423_v47  ;;  %v419_v51 = vmul.f32 %v277_v33, %v645_v24  ;;  %v330_v56 = vmul.f32 %v525_v32, %v329_v50  ;;  %v319_v1 = vmul.f32 %v527_v59, %v842_v28  ;;  %vm374_vm11 = vweird.f32 %v847_v13  ;;  %vm336_vm13 = vmor %vm334_vm7, %vm335_vm9 }
  0xa6   : > { %437 = vst.msk [vmem:[%s820_s27 + $0x18] sm:$0xff] %vm193_vm1, %v421_v40  ;;  %v342_v19 = vsub.f32 1.5, %v341_v49  ;;  %v238_v57 = vpop.xlane.xlu2 %237  ;;  %v235_v20 = vpop.xlane.xlu1 %234  ;;  %vm364_vm12 = vweird.f32 %v849_v34  ;;  %vm325_vm14 = vweird.f32 %v527_v59  ;;  %vm354_vm3 = vweird.f32 %v875_v55 }
  0xa7   : > { %435 = vst.msk [vmem:[%s820_s27 + $0x8] sm:$0xff] %vm193_vm1, %v419_v51  ;;  %v883_v60 = vmax.f32 %v238_v57, 1e-24  ;;  %v885_v61 = vmax.f32 %v235_v20, 1e-24  ;;  %v232_v24 = vpop.xlane.xlu0 %231  ;;  %v529_v62 = vpop.eup %528  ;;  %v331_v0 = vmul.f32 0.5, %v330_v56  ;;  %v320_v14 = vmul.f32 %v527_v59, %v319_v1  ;;  %vm326_vm2 = vmor %vm324_vm10, %vm325_vm14 }
  0xa8   : > { %v343_v63 = vmul.f32 %v523_v30, %v342_v19  ;;  %v531_v2 = vpop.eup %530  ;;  %v369_v8 = vmul.f32 %v529_v62, %v847_v13  ;;  %vm375_vm15 = vweird.f32 %v529_v62 }
  0xa9   : > { %534 = vrsqrt.f32 %v883_v60  ;;  %v332_v10 = vsub.f32 1.5, %v331_v0  ;;  %v359_v15 = vmul.f32 %v531_v2, %v849_v34  ;;  %v321_v21 = vmul.f32 0.5, %v320_v14  ;;  %v533_v23 = vpop.eup %532  ;;  %vm376_vm4 = vmor %vm374_vm11, %vm375_vm15 }
  0xaa   : > { %v347_v9 = vsel %vm346_vm8, %v523_v30, %v343_v63  ;;  %v370_v17 = vmul.f32 %v529_v62, %v369_v8  ;;  %536 = vrsqrt.f32 %v885_v61  ;;  %v349_v12 = vmul.f32 %v533_v23, %v875_v55 }
  0xab   : > { %v426_v16 = vmul.f32 %v347_v9, %v676_v37  ;;  %v333_v58 = vmul.f32 %v525_v32, %v332_v10  ;;  %v360_v22 = vmul.f32 %v531_v2, %v359_v15  ;;  %v905_v37 = vmax.f32 %v232_v24, 1e-24 }
  0xac   : > { %v371_v25 = vmul.f32 0.5, %v370_v17  ;;  %v322_v11 = vsub.f32 1.5, %v321_v21  ;;  %vm365_vm0 = vweird.f32 %v531_v2  ;;  %v350_v36 = vmul.f32 %v533_v23, %v349_v12 }
  0xad   : > { %442 = vst.msk [vmem:[%s820_s27 + $0x40] sm:$0xff] %vm193_vm1, %v426_v16  ;;  %v337_v26 = vsel %vm336_vm13, %v525_v32, %v333_v58  ;;  %v361_v27 = vmul.f32 0.5, %v360_v22  ;;  %538 = vrsqrt.f32 %v905_v37  ;;  %vm366_vm5 = vmor %vm364_vm12, %vm365_vm0  ;;  %vm355_vm6 = vweird.f32 %v533_v23 }
  0xae   : > { %v425_v6 = vmul.f32 %v337_v26, %v680_v38  ;;  %v372_v30 = vsub.f32 1.5, %v371_v25  ;;  %v323_v31 = vmul.f32 %v527_v59, %v322_v11  ;;  %v351_v46 = vmul.f32 0.5, %v350_v36  ;;  %vm356_vm9 = vmor %vm354_vm3, %vm355_vm6 }
  0xaf   : > { %v535_v29 = vpop.eup %534  ;;  %v241_v7 = vpop.xlane.xlu0 %240  ;;  %v362_v35 = vsub.f32 1.5, %v361_v27  ;;  %vm404_vm7 = vweird.f32 %v883_v60  ;;  %vm394_vm11 = vweird.f32 %v885_v61  ;;  %vm384_vm15 = vweird.f32 %v905_v37 }
  0xb0   : > { %v399_v41 = vmul.f32 %v535_v29, %v883_v60  ;;  %v537_v42 = vpop.eup %536  ;;  %441 = vst.msk [vmem:[%s820_s27 + $0x38] sm:$0xff] %vm193_vm1, %v425_v6  ;;  %v373_v43 = vmul.f32 %v529_v62, %v372_v30  ;;  %v917_v38 = vmax.f32 %v241_v7, 1e-24  ;;  %v327_v44 = vsel %vm326_vm2, %v527_v59, %v323_v31 }
  0xb1   : > { %v363_v45 = vmul.f32 %v531_v2, %v362_v35  ;;  %v424_v47 = vmul.f32 %v327_v44, %v684_v39  ;;  %v389_v28 = vmul.f32 %v537_v42, %v885_v61  ;;  %v352_v13 = vsub.f32 1.5, %v351_v46 }
  0xb2   : > { %v400_v32 = vmul.f32 %v535_v29, %v399_v41  ;;  %v377_v48 = vsel %vm376_vm4, %v529_v62, %v373_v43  ;;  %540 = vrsqrt.f32 %v917_v38  ;;  %vm405_vm8 = vweird.f32 %v535_v29 }
  0xb3   : > { %v429_v40 = vmul.f32 %v377_v48, %v715_v52  ;;  %v367_v33 = vsel %vm366_vm5, %v531_v2, %v363_v45  ;;  %v539_v50 = vpop.eup %538  ;;  %440 = vst.msk [vmem:[%s820_s27 + $0x30] sm:$0xff] %vm193_vm1, %v424_v47  ;;  %v390_v39 = vmul.f32 %v537_v42, %v389_v28  ;;  %v353_v34 = vmul.f32 %v533_v23, %v352_v13  ;;  %vm406_vm10 = vmor %vm404_vm7, %vm405_vm8 }
  0xb4   : > { %v401_v49 = vmul.f32 0.5, %v400_v32  ;;  %v428_v51 = vmul.f32 %v367_v33, %v719_v53  ;;  %v379_v52 = vmul.f32 %v539_v50, %v905_v37  ;;  %vm395_vm12 = vweird.f32 %v537_v42 }
  0xb5   : > { %445 = vst.msk [vmem:[%s820_s27 + $0x58] sm:$0xff] %vm193_vm1, %v429_v40  ;;  %v391_v53 = vmul.f32 0.5, %v390_v39  ;;  %v357_v56 = vsel %vm356_vm9, %v533_v23, %v353_v34  ;;  %vm396_vm13 = vmor %vm394_vm11, %vm395_vm12  ;;  %vm385_vm14 = vweird.f32 %v539_v50  ;;  %vm414_vm3 = vweird.f32 %v917_v38 }
  0xb6   : > { %v402_v19 = vsub.f32 1.5, %v401_v49  ;;  %444 = vst.msk [vmem:[%s820_s27 + $0x50] sm:$0xff] %vm193_vm1, %v428_v51  ;;  %v380_v20 = vmul.f32 %v539_v50, %v379_v52  ;;  %v427_v59 = vmul.f32 %v357_v56, %v723_v54  ;;  %vm386_vm0 = vmor %vm384_vm15, %vm385_vm14 }
  0xb7   : > { %v392_v24 = vsub.f32 1.5, %v391_v53 }
  0xb8   : > { %v403_v57 = vmul.f32 %v535_v29, %v402_v19  ;;  %v381_v63 = vmul.f32 0.5, %v380_v20  ;;  %v541_v0 = vpop.eup %540  ;;  %443 = vst.msk [vmem:[%s820_s27 + $0x48] sm:$0xff] %vm193_vm1, %v427_v59 }
  0xb9   : > { %v393_v1 = vmul.f32 %v537_v42, %v392_v24  ;;  %v409_v54 = vmul.f32 %v541_v0, %v917_v38  ;;  %vm415_vm2 = vweird.f32 %v541_v0 }
  0xba   : > { %v407_v62 = vsel %vm406_vm10, %v535_v29, %v403_v57  ;;  %v382_v2 = vsub.f32 1.5, %v381_v63  ;;  %vm416_vm4 = vmor %vm414_vm3, %vm415_vm2 }
  0xbb   : > { %v432_v55 = vmul.f32 %v407_v62, %v754_v3  ;;  %v397_v60 = vsel %vm396_vm13, %v537_v42, %v393_v1  ;;  %v410_v9 = vmul.f32 %v541_v0, %v409_v54 }
  0xbc   : > { %v431_v61 = vmul.f32 %v397_v60, %v758_v4  ;;  %v383_v8 = vmul.f32 %v539_v50, %v382_v2 }
  0xbd   : > { %448 = vst.msk [vmem:[%s820_s27 + $0x70] sm:$0xff] %vm193_vm1, %v432_v55  ;;  %v411_v10 = vmul.f32 0.5, %v410_v9 }
  0xbe   : > { %447 = vst.msk [vmem:[%s820_s27 + $0x68] sm:$0xff] %vm193_vm1, %v431_v61  ;;  %v387_v3 = vsel %vm386_vm0, %v539_v50, %v383_v8 }
  0xbf   : > { %v430_v14 = vmul.f32 %v387_v3, %v762_v5  ;;  %v412_v15 = vsub.f32 1.5, %v411_v10 }
  0xc1   : > { %446 = vst.msk [vmem:[%s820_s27 + $0x60] sm:$0xff] %vm193_vm1, %v430_v14  ;;  %v413_v16 = vmul.f32 %v541_v0, %v412_v15 }
  0xc3   : > { %v417_v4 = vsel %vm416_vm4, %v541_v0, %v413_v16 }
  0xc4   : > { %v433_v17 = vmul.f32 %v417_v4, %v781_v18 }
  0xc6   : > { %449 = vst.msk [vmem:[%s820_s27 + $0x78] sm:$0xff] %vm193_vm1, %v433_v17 }
  0xc7 PF: > { %s12_s9 = sadd.s32 1, %s548_s9  }
  0xc8   : > { %p9_p5 = scmp.ge.s32.totalorder %s12_s9, 4  }
  0xca   :  { %11 = sbr.rel (!%p9_p5) target bundleno = 1 (0x1), region = 55 }

</bundles_post_ra>
